<compile_context>
chip_gen: v6e
topology: v6e:2x2x1
jax: 0.10.0
libtpu: 0.0.40
codegen_flags: <defaults>
</compile_context>

<pallas_src>
import functools

import numpy as np
import jax
import jax.numpy as jnp
from jax.experimental import pallas as pl
from jax.experimental.pallas import tpu as pltpu

MAX_PAD = 3   # largest conv half-width (kernel size 7 -> pad 3)
BN_EPS = 1e-5


# --------------------------------- the kernel --------------------------------

def block_alt_kernel(x_ref, vec_ref, w0_ref, w1_ref, w2s_ref, out_ref,
                     xslab, taps, *,
                     n, l, stride, cin, cout, cin_p, cout_p, nl_valid):
    nl_p = xslab.shape[1]
    mm_dtype = taps.dtype

    # ---- (N, Cin, L) -> gapped channel-major slab (Cin_p, NL_p), zeros elsewhere ----
    xslab[...] = jnp.zeros_like(xslab)
    for i in range(n):   # static unroll; TODO(synk): fori_loop / sample-grid for large N
        xslab[:cin, i * stride:i * stride + l] = x_ref[i, :, :]
    x = xslab[...]

    # 1 on real columns, 0 on inter-sample gap / alignment-pad columns.
    col = jax.lax.broadcasted_iota(jnp.int32, (1, nl_p), 1)
    valid = ((col % stride) < l).astype(jnp.float32)

    vec = vec_ref[...]
    g0, be0 = vec[:cin_p, 0:1], vec[:cin_p, 1:2]
    gs, bes = vec[:cin_p, 2:3], vec[:cin_p, 3:4]
    b0 = vec[:cout_p, 4:5]
    g1, be1, b1 = vec[:cout_p, 5:6], vec[:cout_p, 6:7], vec[:cout_p, 7:8]
    g2, be2, b2 = vec[:cout_p, 8:9], vec[:cout_p, 9:10], vec[:cout_p, 10:11]
    bs = vec[:cout_p, 11:12]

    inv_n = 1.0 / nl_valid

    def bn_stats(t):
        # single-pass sum/sumsq; gap/pad columns of t are zero so they drop out.
        # TODO(synk): shift/two-pass variance if inputs are far from zero-mean.
        s1 = jnp.sum(t, axis=1, keepdims=True)
        s2 = jnp.sum(t * t, axis=1, keepdims=True)
        m = s1 * inv_n
        v = s2 * inv_n - m * m            # biased variance (training-mode BN)
        return m, jax.lax.rsqrt(v + BN_EPS)

    def bn_apply(t, m, r, g, b):
        # trailing * valid re-zeroes the gap columns (= beta - mean*scale there),
        # which the next conv's rolls and the next BN's sums rely on.
        return ((t - m) * (r * g) + b) * valid

    def stack_taps(h, k_size, c_rows):
        pad = (k_size - 1) // 2
        for k in range(k_size):           # static tap loop, written straight to VMEM
            d = k - pad
            xs = h if d == 0 else pltpu.roll(h, shift=(-d) % nl_p, axis=1)
            taps[k * c_rows:(k + 1) * c_rows, :] = xs.astype(mm_dtype)

    # ---- input BN stats, shared by main-path bn_0 and the shortcut bn_0 ----
    m_x, r_x = bn_stats(x)

    # ---- stage 0: BN -> conv7 -> ReLU ----
    h = bn_apply(x, m_x, r_x, g0, be0)
    stack_taps(h, 7, cin_p)
    h = jnp.dot(w0_ref[...], taps[:7 * cin_p, :],
                preferred_element_type=jnp.float32) + b0
    h = jnp.maximum(h, 0.0) * valid

    # ---- stage 1: BN -> conv5 -> ReLU ----
    m, r = bn_stats(h)
    h = bn_apply(h, m, r, g1, be1)
    stack_taps(h, 5, cout_p)
    h = jnp.dot(w1_ref[...], taps[:5 * cout_p, :],
                preferred_element_type=jnp.float32) + b1
    h = jnp.maximum(h, 0.0) * valid

    # ---- stage 2 + shortcut in ONE matmul (output-dim block-stacked weights) ----
    m, r = bn_stats(h)
    h = bn_apply(h, m, r, g2, be2)
    stack_taps(h, 3, cout_p)
    s = (x - m_x) * (r_x * gs) + bes      # shortcut BN; gap columns discarded below
    taps[3 * cout_p:3 * cout_p + cin_p, :] = s.astype(mm_dtype)
    y = jnp.dot(w2s_ref[...], taps[:3 * cout_p + cin_p, :],
                preferred_element_type=jnp.float32)
    res = jnp.maximum(y[:cout_p, :] + b2, 0.0) + (y[cout_p:2 * cout_p, :] + bs)

    # ---- slab -> (N, Cout, L), written directly in the caller's layout ----
    for i in range(n):
        out_ref[i, :, :] = res[:cout, i * stride:i * stride + l]


# --------------------------------- wrapper ------------------------------------

def _rup(v, m):
    return ((v + m - 1) // m) * m


def _pad2(a, rows, cols):
    return jnp.zeros((rows, cols), jnp.float32).at[:a.shape[0], :a.shape[1]].set(a)


def _fold_w(w_koi, cin_pad, cout_pad):
    """(K, Cout, Cin) -> zero-padded, tap-folded (Cout_pad, K*Cin_pad)."""
    k, co, ci = w_koi.shape
    wp = jnp.zeros((k, cout_pad, cin_pad), jnp.float32).at[:, :co, :ci].set(w_koi)
    return jnp.transpose(wp, (1, 0, 2)).reshape(cout_pad, k * cin_pad)


def block_alt_forward(x, params, matmul_dtype=jnp.float32):
    """x: (N, C_in, L) float32 (PyTorch NCL). Returns (N, C_out, L).

    matmul_dtype=jnp.bfloat16 on v6e/v7x gives ~2-3x MXU throughput (breaks
    bit-exact parity with the f32 reference)."""
    n, cin, l = x.shape
    cout = params["w0"].shape[1]
    cin_p, cout_p = _rup(cin, 8), _rup(cout, 8)
    cv = max(cin_p, cout_p)
    stride = _rup(l + MAX_PAD, 128)    # lane-aligned per-sample stripe incl. zero gap
    nl_p = n * stride
    rows_max = max(7 * cin_p, 5 * cout_p, 3 * cout_p + cin_p)

    # --- weight prep (weights are static: hoist/precompute once in production) ---
    w0f = _fold_w(params["w0"], cin_p, cout_p).astype(matmul_dtype)
    w1f = _fold_w(params["w1"], cout_p, cout_p).astype(matmul_dtype)
    w2f = _fold_w(params["w2"], cout_p, cout_p)
    wsf = _pad2(params["ws"][0], cout_p, cin_p)
    w2s = (jnp.zeros((2 * cout_p, 3 * cout_p + cin_p), jnp.float32)
           .at[:cout_p, :3 * cout_p].set(w2f)
           .at[cout_p:, 3 * cout_p:].set(wsf)).astype(matmul_dtype)

    # --- all per-channel vectors packed into one (C, 16) slab (one DMA) ---
    vec = jnp.zeros((cv, 16), jnp.float32)
    for colidx, (name, rows) in enumerate([("g0", cin), ("be0", cin), ("gs", cin),
                                           ("bes", cin), ("b0", cout), ("g1", cout),
                                           ("be1", cout), ("b1", cout), ("g2", cout),
                                           ("be2", cout), ("b2", cout), ("bs", cout)]):
        vec = vec.at[:rows, colidx:colidx + 1].set(params[name])

    kern = functools.partial(
        block_alt_kernel, n=n, l=l, stride=stride, cin=cin, cout=cout,
        cin_p=cin_p, cout_p=cout_p, nl_valid=float(n * l))

    vmem = pl.BlockSpec(memory_space=pltpu.MemorySpace.VMEM)
    return pl.pallas_call(
        kern,
        out_shape=jax.ShapeDtypeStruct((n, cout, l), jnp.float32),
        in_specs=[vmem] * 5,
        out_specs=vmem,
        scratch_shapes=[pltpu.VMEM((cin_p, nl_p), jnp.float32),      # gapped x slab
                        pltpu.VMEM((rows_max, nl_p), matmul_dtype)], # shared tap slab
    )(x, vec, w0f, w1f, w2s)


# ----------------------------- params / reference -----------------------------

def init_params(key, cin, cout):
    ks = jax.random.split(key, 8)

    def w_init(k, shape, fan_in):
        bound = 1.0 / np.sqrt(fan_in)
        return jax.random.uniform(k, shape, jnp.float32, -bound, bound)

    return {
        # BatchNorm default init: gamma=1, beta=0
        "g0": jnp.ones((cin, 1), jnp.float32), "be0": jnp.zeros((cin, 1), jnp.float32),
        "w0": w_init(ks[0], (7, cout, cin), cin * 7),   # Conv1d(in_dim, n_dim, 7), stored (K, O, I)
        "b0": w_init(ks[1], (cout, 1), cin * 7),
        "g1": jnp.ones((cout, 1), jnp.float32), "be1": jnp.zeros((cout, 1), jnp.float32),
        "w1": w_init(ks[2], (5, cout, cout), cout * 5),  # Conv1d(n_dim, n_dim, 5)
        "b1": w_init(ks[3], (cout, 1), cout * 5),
        "g2": jnp.ones((cout, 1), jnp.float32), "be2": jnp.zeros((cout, 1), jnp.float32),
        "w2": w_init(ks[4], (3, cout, cout), cout * 3),  # Conv1d(n_dim, n_dim, 3)
        "b2": w_init(ks[5], (cout, 1), cout * 3),
        "gs": jnp.ones((cin, 1), jnp.float32), "bes": jnp.zeros((cin, 1), jnp.float32),
        "ws": w_init(ks[6], (1, cout, cin), cin),        # shortcut Conv1d(in_dim, n_dim, 1)
        "bs": w_init(ks[7], (cout, 1), cin),
    }


def _bn_ref(x, gamma, beta, eps=BN_EPS):
    mean = x.mean(axis=(0, 2), keepdims=True)
    var = ((x - mean) ** 2).mean(axis=(0, 2), keepdims=True)
    return (x - mean) / jnp.sqrt(var + eps) * gamma.reshape(1, -1, 1) + beta.reshape(1, -1, 1)


def _conv_ref(x, w_koi, b, pad):
    w = jnp.transpose(w_koi, (1, 2, 0))  # (O, I, K)
    y = jax.lax.conv_general_dilated(x, w, (1,), [(pad, pad)],
                                     dimension_numbers=("NCH", "OIH", "NCH"))
    return y + b.reshape(1, -1, 1)


def reference_forward(x, p):
    h = _bn_ref(x, p["g0"], p["be0"])
    h = jax.nn.relu(_conv_ref(h, p["w0"], p["b0"], 3))
    h = _bn_ref(h, p["g1"], p["be1"])
    h = jax.nn.relu(_conv_ref(h, p["w1"], p["b1"], 2))
    h = _bn_ref(h, p["g2"], p["be2"])
    h = jax.nn.relu(_conv_ref(h, p["w2"], p["b2"], 1))
    s = _bn_ref(x, p["gs"], p["bes"])
    s = _conv_ref(s, p["ws"], p["bs"], 0)
    return h + s


# ------------------------------------ main ------------------------------------

if __name__ == "__main__":
    N, CIN, COUT, L = 2, 4, 8, 16   # Block_Alt(in_dim=4, n_dim=8, norm='BN'), seq len 16

    key = jax.random.PRNGKey(0)
    kx, kp = jax.random.split(key)
    x = jax.random.normal(kx, (N, CIN, L), jnp.float32)
    params = init_params(kp, CIN, COUT)

    fwd = jax.jit(block_alt_forward)
    out = jax.block_until_ready(fwd(x, params))
    assert out.shape == (N, COUT, L)

    ref = reference_forward(x, params)
    err = float(jnp.max(jnp.abs(out - ref)))
    if err > 1e-3:
        raise AssertionError(f"Pallas kernel mismatch vs reference: max abs err = {err}")

    print("KERNEL_OK")
</pallas_src>

<mosaic_0001>
module attributes {stable_mosaic.version = 11 : i64} {
  func.func @block_alt_kernel(%arg0: memref<2x4x16xf32, #tpu.memory_space<vmem>>, %arg1: memref<8x16xf32, #tpu.memory_space<vmem>>, %arg2: memref<8x56xf32, #tpu.memory_space<vmem>>, %arg3: memref<8x40xf32, #tpu.memory_space<vmem>>, %arg4: memref<16x32xf32, #tpu.memory_space<vmem>>, %arg5: memref<2x8x16xf32, #tpu.memory_space<vmem>>, %arg6: memref<8x256xf32, #tpu.memory_space<vmem>>, %arg7: memref<56x256xf32, #tpu.memory_space<vmem>>) attributes {dimension_semantics = [], scalar_prefetch = 0 : i64, scratch_operands = 2 : i64, tpu.core_type = #tpu.core_type<tc>} {
    %cst = arith.constant 0.000000e+00 : f32
    %0 = vector.broadcast %cst : f32 to vector<8x256xf32>
    %c0 = arith.constant 0 : index
    %c0_0 = arith.constant 0 : index
    %1 = vector.load %arg6[%c0, %c0_0] : memref<8x256xf32, #tpu.memory_space<vmem>>, vector<8x256xf32>
    tpu.vector_store %arg6[%c0, %c0_0], %0 {strides = array<i32>} : memref<8x256xf32, #tpu.memory_space<vmem>>, vector<8x256xf32>,
    %c0_1 = arith.constant 0 : index
    %c0_2 = arith.constant 0 : index
    %c0_3 = arith.constant 0 : index
    %2 = vector.load %arg0[%c0_1, %c0_2, %c0_3] : memref<2x4x16xf32, #tpu.memory_space<vmem>>, vector<1x4x16xf32>
    %3 = vector.shape_cast %2 : vector<1x4x16xf32> to vector<4x16xf32>
    %c0_4 = arith.constant 0 : index
    %c0_5 = arith.constant 0 : index
    %4 = vector.load %arg6[%c0_4, %c0_5] : memref<8x256xf32, #tpu.memory_space<vmem>>, vector<4x16xf32>
    tpu.vector_store %arg6[%c0_4, %c0_5], %3 {strides = array<i32>} : memref<8x256xf32, #tpu.memory_space<vmem>>, vector<4x16xf32>,
    %c1 = arith.constant 1 : index
    %c0_6 = arith.constant 0 : index
    %c0_7 = arith.constant 0 : index
    %5 = vector.load %arg0[%c1, %c0_6, %c0_7] : memref<2x4x16xf32, #tpu.memory_space<vmem>>, vector<1x4x16xf32>
    %6 = vector.shape_cast %5 : vector<1x4x16xf32> to vector<4x16xf32>
    %c0_8 = arith.constant 0 : index
    %c128 = arith.constant 128 : index
    %7 = vector.load %arg6[%c0_8, %c128] : memref<8x256xf32, #tpu.memory_space<vmem>>, vector<4x16xf32>
    tpu.vector_store %arg6[%c0_8, %c128], %6 {strides = array<i32>} : memref<8x256xf32, #tpu.memory_space<vmem>>, vector<4x16xf32>,
    %c0_9 = arith.constant 0 : index
    %c0_10 = arith.constant 0 : index
    %8 = vector.load %arg6[%c0_9, %c0_10] : memref<8x256xf32, #tpu.memory_space<vmem>>, vector<8x256xf32>
    %9 = tpu.iota {dimensions = array<i32: 1>} : vector<1x256xi32>
    %c128_i32 = arith.constant 128 : i32
    %c0_i32 = arith.constant 0 : i32
    %10 = arith.cmpi eq, %c128_i32, %c0_i32 : i32
    %c1_i32 = arith.constant 1 : i32
    %11 = arith.select %10, %c1_i32, %c128_i32 : i32
    %12 = vector.broadcast %11 : i32 to vector<1x256xi32>
    %13 = arith.remsi %9, %12 : vector<1x256xi32>
    %c0_i32_11 = arith.constant 0 : i32
    %14 = vector.broadcast %c0_i32_11 : i32 to vector<1x256xi32>
    %15 = arith.cmpi ne, %13, %14 : vector<1x256xi32>
    %c0_i32_12 = arith.constant 0 : i32
    %16 = vector.broadcast %c0_i32_12 : i32 to vector<1x256xi32>
    %17 = arith.cmpi slt, %13, %16 : vector<1x256xi32>
    %c0_i32_13 = arith.constant 0 : i32
    %18 = arith.cmpi slt, %11, %c0_i32_13 : i32
    %19 = vector.broadcast %18 : i1 to vector<1x256xi1>
    %20 = vector.broadcast %19 : vector<1x256xi1> to vector<1x256xi1>
    %21 = arith.xori %17, %20 : vector<1x256xi1>
    %22 = arith.andi %21, %15 : vector<1x256xi1>
    %23 = vector.broadcast %11 : i32 to vector<1x256xi32>
    %24 = arith.addi %13, %23 : vector<1x256xi32>
    %25 = arith.select %22, %24, %13 : vector<1x256xi1>, vector<1x256xi32>
    %c16_i32 = arith.constant 16 : i32
    %26 = vector.broadcast %c16_i32 : i32 to vector<1x256xi32>
    %27 = arith.cmpi slt, %25, %26 : vector<1x256xi32>
    %28 = arith.extui %27 : vector<1x256xi1> to vector<1x256xi32>
    %29 = arith.sitofp %28 : vector<1x256xi32> to vector<1x256xf32>
    %c0_14 = arith.constant 0 : index
    %c0_15 = arith.constant 0 : index
    %30 = vector.load %arg1[%c0_14, %c0_15] : memref<8x16xf32, #tpu.memory_space<vmem>>, vector<8x16xf32>
    %31 = vector.extract_strided_slice %30 {offsets = [0, 0], sizes = [8, 1], strides = [1, 1]} : vector<8x16xf32> to vector<8x1xf32>
    %32 = vector.extract_strided_slice %30 {offsets = [0, 1], sizes = [8, 1], strides = [1, 1]} : vector<8x16xf32> to vector<8x1xf32>
    %33 = vector.extract_strided_slice %30 {offsets = [0, 2], sizes = [8, 1], strides = [1, 1]} : vector<8x16xf32> to vector<8x1xf32>
    %34 = vector.extract_strided_slice %30 {offsets = [0, 3], sizes = [8, 1], strides = [1, 1]} : vector<8x16xf32> to vector<8x1xf32>
    %35 = vector.extract_strided_slice %30 {offsets = [0, 4], sizes = [8, 1], strides = [1, 1]} : vector<8x16xf32> to vector<8x1xf32>
    %36 = vector.extract_strided_slice %30 {offsets = [0, 5], sizes = [8, 1], strides = [1, 1]} : vector<8x16xf32> to vector<8x1xf32>
    %37 = vector.extract_strided_slice %30 {offsets = [0, 6], sizes = [8, 1], strides = [1, 1]} : vector<8x16xf32> to vector<8x1xf32>
    %38 = vector.extract_strided_slice %30 {offsets = [0, 7], sizes = [8, 1], strides = [1, 1]} : vector<8x16xf32> to vector<8x1xf32>
    %39 = vector.extract_strided_slice %30 {offsets = [0, 8], sizes = [8, 1], strides = [1, 1]} : vector<8x16xf32> to vector<8x1xf32>
    %40 = vector.extract_strided_slice %30 {offsets = [0, 9], sizes = [8, 1], strides = [1, 1]} : vector<8x16xf32> to vector<8x1xf32>
    %41 = vector.extract_strided_slice %30 {offsets = [0, 10], sizes = [8, 1], strides = [1, 1]} : vector<8x16xf32> to vector<8x1xf32>
    %42 = vector.extract_strided_slice %30 {offsets = [0, 11], sizes = [8, 1], strides = [1, 1]} : vector<8x16xf32> to vector<8x1xf32>
    %cst_16 = arith.constant dense<0.000000e+00> : vector<8xf32>
    %43 = vector.multi_reduction <add>, %8, %cst_16 [1] : vector<8x256xf32> to vector<8xf32>
    %44 = vector.shape_cast %43 : vector<8xf32> to vector<8x1xf32>
    %45 = arith.mulf %8, %8 : vector<8x256xf32>
    %cst_17 = arith.constant dense<0.000000e+00> : vector<8xf32>
    %46 = vector.multi_reduction <add>, %45, %cst_17 [1] : vector<8x256xf32> to vector<8xf32>
    %47 = vector.shape_cast %46 : vector<8xf32> to vector<8x1xf32>
    %cst_18 = arith.constant 3.125000e-02 : f32
    %48 = vector.broadcast %cst_18 : f32 to vector<8x1xf32>
    %49 = arith.mulf %44, %48 : vector<8x1xf32>
    %cst_19 = arith.constant 3.125000e-02 : f32
    %50 = vector.broadcast %cst_19 : f32 to vector<8x1xf32>
    %51 = arith.mulf %47, %50 : vector<8x1xf32>
    %52 = arith.mulf %49, %49 : vector<8x1xf32>
    %53 = arith.subf %51, %52 : vector<8x1xf32>
    %cst_20 = arith.constant 9.99999974E-6 : f32
    %54 = vector.broadcast %cst_20 : f32 to vector<8x1xf32>
    %55 = arith.addf %53, %54 : vector<8x1xf32>
    %56 = math.rsqrt %55 : vector<8x1xf32>
    %57 = vector.broadcast %49 : vector<8x1xf32> to vector<8x256xf32>
    %58 = arith.subf %8, %57 : vector<8x256xf32>
    %59 = arith.mulf %56, %31 : vector<8x1xf32>
    %60 = vector.broadcast %59 : vector<8x1xf32> to vector<8x256xf32>
    %61 = arith.mulf %58, %60 : vector<8x256xf32>
    %62 = vector.broadcast %32 : vector<8x1xf32> to vector<8x256xf32>
    %63 = arith.addf %61, %62 : vector<8x256xf32>
    %64 = vector.broadcast %29 : vector<1x256xf32> to vector<8x256xf32>
    %65 = arith.mulf %63, %64 : vector<8x256xf32>
    %c3_i32 = arith.constant 3 : i32
    %66 = tpu.dynamic_rotate %65 by %c3_i32 dim 1 : vector<8x256xf32>, i32 -> vector<8x256xf32>
    %c0_21 = arith.constant 0 : index
    %c0_22 = arith.constant 0 : index
    %67 = vector.load %arg7[%c0_21, %c0_22] : memref<56x256xf32, #tpu.memory_space<vmem>>, vector<8x256xf32>
    tpu.vector_store %arg7[%c0_21, %c0_22], %66 {strides = array<i32>} : memref<56x256xf32, #tpu.memory_space<vmem>>, vector<8x256xf32>,
    %c2_i32 = arith.constant 2 : i32
    %68 = tpu.dynamic_rotate %65 by %c2_i32 dim 1 : vector<8x256xf32>, i32 -> vector<8x256xf32>
    %c8 = arith.constant 8 : index
    %c0_23 = arith.constant 0 : index
    %69 = vector.load %arg7[%c8, %c0_23] : memref<56x256xf32, #tpu.memory_space<vmem>>, vector<8x256xf32>
    tpu.vector_store %arg7[%c8, %c0_23], %68 {strides = array<i32>} : memref<56x256xf32, #tpu.memory_space<vmem>>, vector<8x256xf32>,
    %c1_i32_24 = arith.constant 1 : i32
    %70 = tpu.dynamic_rotate %65 by %c1_i32_24 dim 1 : vector<8x256xf32>, i32 -> vector<8x256xf32>
    %c16 = arith.constant 16 : index
    %c0_25 = arith.constant 0 : index
    %71 = vector.load %arg7[%c16, %c0_25] : memref<56x256xf32, #tpu.memory_space<vmem>>, vector<8x256xf32>
    tpu.vector_store %arg7[%c16, %c0_25], %70 {strides = array<i32>} : memref<56x256xf32, #tpu.memory_space<vmem>>, vector<8x256xf32>,
    %c24 = arith.constant 24 : index
    %c0_26 = arith.constant 0 : index
    %72 = vector.load %arg7[%c24, %c0_26] : memref<56x256xf32, #tpu.memory_space<vmem>>, vector<8x256xf32>
    tpu.vector_store %arg7[%c24, %c0_26], %65 {strides = array<i32>} : memref<56x256xf32, #tpu.memory_space<vmem>>, vector<8x256xf32>,
    %c255_i32 = arith.constant 255 : i32
    %73 = tpu.dynamic_rotate %65 by %c255_i32 dim 1 : vector<8x256xf32>, i32 -> vector<8x256xf32>
    %c32 = arith.constant 32 : index
    %c0_27 = arith.constant 0 : index
    %74 = vector.load %arg7[%c32, %c0_27] : memref<56x256xf32, #tpu.memory_space<vmem>>, vector<8x256xf32>
    tpu.vector_store %arg7[%c32, %c0_27], %73 {strides = array<i32>} : memref<56x256xf32, #tpu.memory_space<vmem>>, vector<8x256xf32>,
    %c254_i32 = arith.constant 254 : i32
    %75 = tpu.dynamic_rotate %65 by %c254_i32 dim 1 : vector<8x256xf32>, i32 -> vector<8x256xf32>
    %c40 = arith.constant 40 : index
    %c0_28 = arith.constant 0 : index
    %76 = vector.load %arg7[%c40, %c0_28] : memref<56x256xf32, #tpu.memory_space<vmem>>, vector<8x256xf32>
    tpu.vector_store %arg7[%c40, %c0_28], %75 {strides = array<i32>} : memref<56x256xf32, #tpu.memory_space<vmem>>, vector<8x256xf32>,
    %c253_i32 = arith.constant 253 : i32
    %77 = tpu.dynamic_rotate %65 by %c253_i32 dim 1 : vector<8x256xf32>, i32 -> vector<8x256xf32>
    %c48 = arith.constant 48 : index
    %c0_29 = arith.constant 0 : index
    %78 = vector.load %arg7[%c48, %c0_29] : memref<56x256xf32, #tpu.memory_space<vmem>>, vector<8x256xf32>
    tpu.vector_store %arg7[%c48, %c0_29], %77 {strides = array<i32>} : memref<56x256xf32, #tpu.memory_space<vmem>>, vector<8x256xf32>,
    %c0_30 = arith.constant 0 : index
    %c0_31 = arith.constant 0 : index
    %79 = vector.load %arg2[%c0_30, %c0_31] : memref<8x56xf32, #tpu.memory_space<vmem>>, vector<8x56xf32>
    %c0_32 = arith.constant 0 : index
    %c0_33 = arith.constant 0 : index
    %80 = vector.load %arg7[%c0_32, %c0_33] : memref<56x256xf32, #tpu.memory_space<vmem>>, vector<56x256xf32>
    %cst_34 = arith.constant dense<0.000000e+00> : vector<8x256xf32>
    %81 = tpu.matmul %79, %80, %cst_34 {dimension_numbers = #tpu.dot_dimension_numbers<[1], [0], [0], [1], [0, 0, 1, 1], [], []>} : vector<8x56xf32>, vector<56x256xf32>, vector<8x256xf32> -> vector<8x256xf32>
    %82 = vector.broadcast %35 : vector<8x1xf32> to vector<8x256xf32>
    %83 = arith.addf %81, %82 : vector<8x256xf32>
    %cst_35 = arith.constant 0.000000e+00 : f32
    %84 = vector.broadcast %cst_35 : f32 to vector<8x256xf32>
    %85 = arith.maximumf %83, %84 : vector<8x256xf32>
    %86 = vector.broadcast %29 : vector<1x256xf32> to vector<8x256xf32>
    %87 = arith.mulf %85, %86 : vector<8x256xf32>
    %cst_36 = arith.constant dense<0.000000e+00> : vector<8xf32>
    %88 = vector.multi_reduction <add>, %87, %cst_36 [1] : vector<8x256xf32> to vector<8xf32>
    %89 = vector.shape_cast %88 : vector<8xf32> to vector<8x1xf32>
    %90 = arith.mulf %87, %87 : vector<8x256xf32>
    %cst_37 = arith.constant dense<0.000000e+00> : vector<8xf32>
    %91 = vector.multi_reduction <add>, %90, %cst_37 [1] : vector<8x256xf32> to vector<8xf32>
    %92 = vector.shape_cast %91 : vector<8xf32> to vector<8x1xf32>
    %cst_38 = arith.constant 3.125000e-02 : f32
    %93 = vector.broadcast %cst_38 : f32 to vector<8x1xf32>
    %94 = arith.mulf %89, %93 : vector<8x1xf32>
    %cst_39 = arith.constant 3.125000e-02 : f32
    %95 = vector.broadcast %cst_39 : f32 to vector<8x1xf32>
    %96 = arith.mulf %92, %95 : vector<8x1xf32>
    %97 = arith.mulf %94, %94 : vector<8x1xf32>
    %98 = arith.subf %96, %97 : vector<8x1xf32>
    %cst_40 = arith.constant 9.99999974E-6 : f32
    %99 = vector.broadcast %cst_40 : f32 to vector<8x1xf32>
    %100 = arith.addf %98, %99 : vector<8x1xf32>
    %101 = math.rsqrt %100 : vector<8x1xf32>
    %102 = vector.broadcast %94 : vector<8x1xf32> to vector<8x256xf32>
    %103 = arith.subf %87, %102 : vector<8x256xf32>
    %104 = arith.mulf %101, %36 : vector<8x1xf32>
    %105 = vector.broadcast %104 : vector<8x1xf32> to vector<8x256xf32>
    %106 = arith.mulf %103, %105 : vector<8x256xf32>
    %107 = vector.broadcast %37 : vector<8x1xf32> to vector<8x256xf32>
    %108 = arith.addf %106, %107 : vector<8x256xf32>
    %109 = vector.broadcast %29 : vector<1x256xf32> to vector<8x256xf32>
    %110 = arith.mulf %108, %109 : vector<8x256xf32>
    %c2_i32_41 = arith.constant 2 : i32
    %111 = tpu.dynamic_rotate %110 by %c2_i32_41 dim 1 : vector<8x256xf32>, i32 -> vector<8x256xf32>
    %c0_42 = arith.constant 0 : index
    %c0_43 = arith.constant 0 : index
    %112 = vector.load %arg7[%c0_42, %c0_43] : memref<56x256xf32, #tpu.memory_space<vmem>>, vector<8x256xf32>
    tpu.vector_store %arg7[%c0_42, %c0_43], %111 {strides = array<i32>} : memref<56x256xf32, #tpu.memory_space<vmem>>, vector<8x256xf32>,
    %c1_i32_44 = arith.constant 1 : i32
    %113 = tpu.dynamic_rotate %110 by %c1_i32_44 dim 1 : vector<8x256xf32>, i32 -> vector<8x256xf32>
    %c8_45 = arith.constant 8 : index
    %c0_46 = arith.constant 0 : index
    %114 = vector.load %arg7[%c8_45, %c0_46] : memref<56x256xf32, #tpu.memory_space<vmem>>, vector<8x256xf32>
    tpu.vector_store %arg7[%c8_45, %c0_46], %113 {strides = array<i32>} : memref<56x256xf32, #tpu.memory_space<vmem>>, vector<8x256xf32>,
    %c16_47 = arith.constant 16 : index
    %c0_48 = arith.constant 0 : index
    %115 = vector.load %arg7[%c16_47, %c0_48] : memref<56x256xf32, #tpu.memory_space<vmem>>, vector<8x256xf32>
    tpu.vector_store %arg7[%c16_47, %c0_48], %110 {strides = array<i32>} : memref<56x256xf32, #tpu.memory_space<vmem>>, vector<8x256xf32>,
    %c255_i32_49 = arith.constant 255 : i32
    %116 = tpu.dynamic_rotate %110 by %c255_i32_49 dim 1 : vector<8x256xf32>, i32 -> vector<8x256xf32>
    %c24_50 = arith.constant 24 : index
    %c0_51 = arith.constant 0 : index
    %117 = vector.load %arg7[%c24_50, %c0_51] : memref<56x256xf32, #tpu.memory_space<vmem>>, vector<8x256xf32>
    tpu.vector_store %arg7[%c24_50, %c0_51], %116 {strides = array<i32>} : memref<56x256xf32, #tpu.memory_space<vmem>>, vector<8x256xf32>,
    %c254_i32_52 = arith.constant 254 : i32
    %118 = tpu.dynamic_rotate %110 by %c254_i32_52 dim 1 : vector<8x256xf32>, i32 -> vector<8x256xf32>
    %c32_53 = arith.constant 32 : index
    %c0_54 = arith.constant 0 : index
    %119 = vector.load %arg7[%c32_53, %c0_54] : memref<56x256xf32, #tpu.memory_space<vmem>>, vector<8x256xf32>
    tpu.vector_store %arg7[%c32_53, %c0_54], %118 {strides = array<i32>} : memref<56x256xf32, #tpu.memory_space<vmem>>, vector<8x256xf32>,
    %c0_55 = arith.constant 0 : index
    %c0_56 = arith.constant 0 : index
    %120 = vector.load %arg3[%c0_55, %c0_56] : memref<8x40xf32, #tpu.memory_space<vmem>>, vector<8x40xf32>
    %c0_57 = arith.constant 0 : index
    %c0_58 = arith.constant 0 : index
    %121 = vector.load %arg7[%c0_57, %c0_58] : memref<56x256xf32, #tpu.memory_space<vmem>>, vector<40x256xf32>
    %cst_59 = arith.constant dense<0.000000e+00> : vector<8x256xf32>
    %122 = tpu.matmul %120, %121, %cst_59 {dimension_numbers = #tpu.dot_dimension_numbers<[1], [0], [0], [1], [0, 0, 1, 1], [], []>} : vector<8x40xf32>, vector<40x256xf32>, vector<8x256xf32> -> vector<8x256xf32>
    %123 = vector.broadcast %38 : vector<8x1xf32> to vector<8x256xf32>
    %124 = arith.addf %122, %123 : vector<8x256xf32>
    %cst_60 = arith.constant 0.000000e+00 : f32
    %125 = vector.broadcast %cst_60 : f32 to vector<8x256xf32>
    %126 = arith.maximumf %124, %125 : vector<8x256xf32>
    %127 = vector.broadcast %29 : vector<1x256xf32> to vector<8x256xf32>
    %128 = arith.mulf %126, %127 : vector<8x256xf32>
    %cst_61 = arith.constant dense<0.000000e+00> : vector<8xf32>
    %129 = vector.multi_reduction <add>, %128, %cst_61 [1] : vector<8x256xf32> to vector<8xf32>
    %130 = vector.shape_cast %129 : vector<8xf32> to vector<8x1xf32>
    %131 = arith.mulf %128, %128 : vector<8x256xf32>
    %cst_62 = arith.constant dense<0.000000e+00> : vector<8xf32>
    %132 = vector.multi_reduction <add>, %131, %cst_62 [1] : vector<8x256xf32> to vector<8xf32>
    %133 = vector.shape_cast %132 : vector<8xf32> to vector<8x1xf32>
    %cst_63 = arith.constant 3.125000e-02 : f32
    %134 = vector.broadcast %cst_63 : f32 to vector<8x1xf32>
    %135 = arith.mulf %130, %134 : vector<8x1xf32>
    %cst_64 = arith.constant 3.125000e-02 : f32
    %136 = vector.broadcast %cst_64 : f32 to vector<8x1xf32>
    %137 = arith.mulf %133, %136 : vector<8x1xf32>
    %138 = arith.mulf %135, %135 : vector<8x1xf32>
    %139 = arith.subf %137, %138 : vector<8x1xf32>
    %cst_65 = arith.constant 9.99999974E-6 : f32
    %140 = vector.broadcast %cst_65 : f32 to vector<8x1xf32>
    %141 = arith.addf %139, %140 : vector<8x1xf32>
    %142 = math.rsqrt %141 : vector<8x1xf32>
    %143 = vector.broadcast %135 : vector<8x1xf32> to vector<8x256xf32>
    %144 = arith.subf %128, %143 : vector<8x256xf32>
    %145 = arith.mulf %142, %39 : vector<8x1xf32>
    %146 = vector.broadcast %145 : vector<8x1xf32> to vector<8x256xf32>
    %147 = arith.mulf %144, %146 : vector<8x256xf32>
    %148 = vector.broadcast %40 : vector<8x1xf32> to vector<8x256xf32>
    %149 = arith.addf %147, %148 : vector<8x256xf32>
    %150 = vector.broadcast %29 : vector<1x256xf32> to vector<8x256xf32>
    %151 = arith.mulf %149, %150 : vector<8x256xf32>
    %c1_i32_66 = arith.constant 1 : i32
    %152 = tpu.dynamic_rotate %151 by %c1_i32_66 dim 1 : vector<8x256xf32>, i32 -> vector<8x256xf32>
    %c0_67 = arith.constant 0 : index
    %c0_68 = arith.constant 0 : index
    %153 = vector.load %arg7[%c0_67, %c0_68] : memref<56x256xf32, #tpu.memory_space<vmem>>, vector<8x256xf32>
    tpu.vector_store %arg7[%c0_67, %c0_68], %152 {strides = array<i32>} : memref<56x256xf32, #tpu.memory_space<vmem>>, vector<8x256xf32>,
    %c8_69 = arith.constant 8 : index
    %c0_70 = arith.constant 0 : index
    %154 = vector.load %arg7[%c8_69, %c0_70] : memref<56x256xf32, #tpu.memory_space<vmem>>, vector<8x256xf32>
    tpu.vector_store %arg7[%c8_69, %c0_70], %151 {strides = array<i32>} : memref<56x256xf32, #tpu.memory_space<vmem>>, vector<8x256xf32>,
    %c255_i32_71 = arith.constant 255 : i32
    %155 = tpu.dynamic_rotate %151 by %c255_i32_71 dim 1 : vector<8x256xf32>, i32 -> vector<8x256xf32>
    %c16_72 = arith.constant 16 : index
    %c0_73 = arith.constant 0 : index
    %156 = vector.load %arg7[%c16_72, %c0_73] : memref<56x256xf32, #tpu.memory_space<vmem>>, vector<8x256xf32>
    tpu.vector_store %arg7[%c16_72, %c0_73], %155 {strides = array<i32>} : memref<56x256xf32, #tpu.memory_space<vmem>>, vector<8x256xf32>,
    %157 = vector.broadcast %49 : vector<8x1xf32> to vector<8x256xf32>
    %158 = arith.subf %8, %157 : vector<8x256xf32>
    %159 = arith.mulf %56, %33 : vector<8x1xf32>
    %160 = vector.broadcast %159 : vector<8x1xf32> to vector<8x256xf32>
    %161 = arith.mulf %158, %160 : vector<8x256xf32>
    %162 = vector.broadcast %34 : vector<8x1xf32> to vector<8x256xf32>
    %163 = arith.addf %161, %162 : vector<8x256xf32>
    %c24_74 = arith.constant 24 : index
    %c0_75 = arith.constant 0 : index
    %164 = vector.load %arg7[%c24_74, %c0_75] : memref<56x256xf32, #tpu.memory_space<vmem>>, vector<8x256xf32>
    tpu.vector_store %arg7[%c24_74, %c0_75], %163 {strides = array<i32>} : memref<56x256xf32, #tpu.memory_space<vmem>>, vector<8x256xf32>,
    %c0_76 = arith.constant 0 : index
    %c0_77 = arith.constant 0 : index
    %165 = vector.load %arg4[%c0_76, %c0_77] : memref<16x32xf32, #tpu.memory_space<vmem>>, vector<16x32xf32>
    %c0_78 = arith.constant 0 : index
    %c0_79 = arith.constant 0 : index
    %166 = vector.load %arg7[%c0_78, %c0_79] : memref<56x256xf32, #tpu.memory_space<vmem>>, vector<32x256xf32>
    %cst_80 = arith.constant dense<0.000000e+00> : vector<16x256xf32>
    %167 = tpu.matmul %165, %166, %cst_80 {dimension_numbers = #tpu.dot_dimension_numbers<[1], [0], [0], [1], [0, 0, 1, 1], [], []>} : vector<16x32xf32>, vector<32x256xf32>, vector<16x256xf32> -> vector<16x256xf32>
    %168 = vector.extract_strided_slice %167 {offsets = [0, 0], sizes = [8, 256], strides = [1, 1]} : vector<16x256xf32> to vector<8x256xf32>
    %169 = vector.broadcast %41 : vector<8x1xf32> to vector<8x256xf32>
    %170 = arith.addf %168, %169 : vector<8x256xf32>
    %cst_81 = arith.constant 0.000000e+00 : f32
    %171 = vector.broadcast %cst_81 : f32 to vector<8x256xf32>
    %172 = arith.maximumf %170, %171 : vector<8x256xf32>
    %173 = vector.extract_strided_slice %167 {offsets = [8, 0], sizes = [8, 256], strides = [1, 1]} : vector<16x256xf32> to vector<8x256xf32>
    %174 = vector.broadcast %42 : vector<8x1xf32> to vector<8x256xf32>
    %175 = arith.addf %173, %174 : vector<8x256xf32>
    %176 = arith.addf %172, %175 : vector<8x256xf32>
    %177 = vector.extract_strided_slice %176 {offsets = [0, 0], sizes = [8, 16], strides = [1, 1]} : vector<8x256xf32> to vector<8x16xf32>
    %c0_82 = arith.constant 0 : index
    %c0_83 = arith.constant 0 : index
    %c0_84 = arith.constant 0 : index
    %178 = vector.load %arg5[%c0_82, %c0_83, %c0_84] : memref<2x8x16xf32, #tpu.memory_space<vmem>>, vector<1x8x16xf32>
    %179 = vector.shape_cast %178 : vector<1x8x16xf32> to vector<8x16xf32>
    %180 = vector.shape_cast %177 : vector<8x16xf32> to vector<1x8x16xf32>
    tpu.vector_store %arg5[%c0_82, %c0_83, %c0_84], %180 {strides = array<i32>} : memref<2x8x16xf32, #tpu.memory_space<vmem>>, vector<1x8x16xf32>,
    %181 = vector.extract_strided_slice %176 {offsets = [0, 128], sizes = [8, 16], strides = [1, 1]} : vector<8x256xf32> to vector<8x16xf32>
    %c1_85 = arith.constant 1 : index
    %c0_86 = arith.constant 0 : index
    %c0_87 = arith.constant 0 : index
    %182 = vector.load %arg5[%c1_85, %c0_86, %c0_87] : memref<2x8x16xf32, #tpu.memory_space<vmem>>, vector<1x8x16xf32>
    %183 = vector.shape_cast %182 : vector<1x8x16xf32> to vector<8x16xf32>
    %184 = vector.shape_cast %181 : vector<8x16xf32> to vector<1x8x16xf32>
    tpu.vector_store %arg5[%c1_85, %c0_86, %c0_87], %184 {strides = array<i32>} : memref<2x8x16xf32, #tpu.memory_space<vmem>>, vector<1x8x16xf32>,
    return
  }
}

</mosaic_0001>

<bundles_post_ra>
// kernel: block_alt_forward.1
= control target key start
LH: loop header
LB: loop body
LE: loop exit
PB: predicated region body
PF: predicated region fallthrough
CT: control target
= control target key end

     0   :  { %vm24_vm0 = vcmask 125952   ;;  %v676_v2 = vmov 0.0   ;;  %s869_s0 = inlined_call_operand.vmem [shape: f32[2,4,16], index: 0, kind: input, shape index: {}]   ;;  %s870_s1 = inlined_call_operand.vmem [shape: f32[8,16], index: 1, kind: input, shape index: {}]   ;;  %s871_s2 = inlined_call_operand.vmem [shape: f32[8,56], index: 2, kind: input, shape index: {}]   ;;  %s872_s3 = inlined_call_operand.vmem [shape: f32[8,40], index: 3, kind: input, shape index: {}]   ;;  %s873_s4 = inlined_call_operand.vmem [shape: f32[16,32], index: 4, kind: input, shape index: {}]   ;;  %s874_s5 = inlined_call_operand.hbm [shape: f32[2,8,16], index: 5, kind: output, shape index: {}]  }
   0x1   :  { %v23_v0 = vld [vmem:[%s869_s0] sm:$0xf]  ;;  %v606_v1 = vld [vmem:[%s869_s0 + $0x4] sm:$0xf]  ;;  %21 = vst [vmem:[#allocation2] sm:$0xff] %v676_v2  ;;  %22 = vst [vmem:[#allocation2 + $0x8] sm:$0xff] %v676_v2  ;;  %241 = vmatprep.mubr.f32.mxu0 %v676_v2  ;;  %401 = vmatprep.mubr.f32.mxu1 %v676_v2 }
   0x2   :  { %10 = vsyncpa [#allocation5], 0  ;;  %25 = vst.msk [vmem:[#allocation2] sm:$0xf] %vm24_vm0, %v23_v0  ;;  %v677_v9 = vmov 0   ;;  %v741_v17 = vld [vmem:[%s870_s1] sm:$0xff]  ;;  %v31_v21 = vlaneseq }
   0x3   :  { %28 = vst.msk [vmem:[#allocation2 + $0x8] sm:$0xf] %vm24_vm0, %v606_v1  ;;  %635 = vset.pattern.permute.xlu1 %v677_v9  ;;  %v678_v20 = vmov 1   ;;  %s679_s1 = smov 125   ;;  %s680_s23 = smov 126   ;;  %v685_v37 = vmov 4  }
   0x4   :  { %v748_v22 = vand.u32 127, %v31_v21  ;;  %s681_s24 = smov 1   ;;  %s682_s25 = smov 2   ;;  %v154_v62 = vld [vmem:[%s871_s2] sm:$0xff]  ;;  %vm173_vm9 = vcmask 457728   ;;  %vm333_vm10 = vcmask 326656  }
   0x5   :  { %s683_s26 = smov 127   ;;  %s684_s27 = smov 3   ;;  %vm486_vm11 = vcmask 261120   ;;  %vm586_vm12 = vcmask 130048  }
   0x6   :  { %v33_v23 = vadd.s32 128, %v748_v22  ;;  %vm58_vm1 = vcmp.lt.s32.totalorder %v748_v22, 16  ;;  %vm149_vm3 = vcmp.lt.s32.totalorder %v748_v22, 125  ;;  %vm140_vm4 = vcmp.lt.s32.totalorder %v748_v22, 126  ;;  %s695_s9 = smov [#allocation4]  }
   0x7   :  { %v759_v30 = vsel %vm58_vm1, 1.0, %v676_v2  ;;  %vm131_vm5 = vcmp.lt.s32.totalorder %v748_v22, 127  ;;  %vm120_vm6 = vcmp.lt.s32.totalorder %v748_v22, 1  ;;  %vm111_vm7 = vcmp.lt.s32.totalorder %v748_v22, 2  ;;  %s595_s10 = sshll.u32 %s695_s9, 4  ;;  %s596_s10 = int_to_ptr.vmem [resolvable:$true] %s595_s10 }
   0x8   :  { %v45_v24 = vand.u32 127, %v33_v23  ;;  %vm102_vm8 = vcmp.lt.s32.totalorder %v748_v22, 3  ;;  %p659_p1 = scmp.lt.s32.totalorder %s596_s10, %s596_s10 }
   0x9   :  { %v29_v3 = vld [vmem:[#allocation2] sm:$0xff] }
   0xa   :  { %v30_v4 = vld [vmem:[#allocation2 + $0x8] sm:$0xff]  ;;  %v68_v6 = vmul.f32 %v29_v3, %v29_v3  ;;  %vm59_vm2 = vcmp.lt.s32.totalorder %v45_v24, 16 }
   0xb   :  { %v65_v5 = vadd.f32 %v30_v4, %v29_v3  ;;  %v69_v7 = vmul.f32 %v30_v4, %v30_v4  ;;  %v762_v31 = vsel %vm59_vm2, 1.0, %v676_v2 }
   0xd   :  { %66 = vadd.xlane.f32.xlu0 %v65_v5  ;;  %v70_v8 = vadd.f32 %v69_v7, %v68_v6 }
  0x11   :  { %71 = vadd.xlane.f32.xlu0 %v70_v8 }
  0x96   :  { %v67_v10 = vpop.xlane.xlu0 %66 }
  0x97   :  { %v73_v11 = vmul.f32 0.03125, %v67_v10 }
  0x99   :  { %v75_v13 = vmul.f32 %v73_v11, %v73_v11  ;;  %v751_v26 = vsub.f32 %v29_v3, %v73_v11  ;;  %v753_v27 = vsub.f32 %v30_v4, %v73_v11 }
  0x9a   :  { %v72_v12 = vpop.xlane.xlu0 %71 }
  0x9b   :  { %v74_v14 = vmul.f32 0.03125, %v72_v12 }
  0x9d   :  { %v76_v15 = vsub.f32 %v74_v14, %v75_v13  ;;  %v686_v13 = vmov 5   ;;  %v687_v14 = vmov 6  }
  0x9e   :  { %638 = vset.pattern.permute.xlu0 %v686_v13 }
  0x9f   :  { %v77_v16 = vadd.f32 1e-05, %v76_v15 }
  0xa1   :  { %648 = vrsqrt.f32 %v77_v16 }
  0xae   :  { %v649_v18 = vpop.eup %648 }
  0xaf   :  { %v744_v19 = vmul.f32 %v649_v18, %v741_v17 }
  0xb1   :  { %84 = vperm.xlu1 %635, %v744_v19  }
  0xb5   :  { %636 = vset.pattern.permute.xlu1 %v678_v20 }
  0xb6   :  { %91 = vperm.xlu1 %636, %v741_v17  }
  0xba   :  { %637 = vset.pattern.permute.xlu1 %v685_v37 }
 0x12c   :  { %v85_v25 = vpop.permute.xlu1 %84 }
 0x12d   :  { %v87_v28 = vmul.f32 %v85_v25, %v751_v26  ;;  %v88_v29 = vmul.f32 %v85_v25, %v753_v27 }
 0x131   :  { %v92_v32 = vpop.permute.xlu1 %91 }
 0x132   :  { %v94_v33 = vadd.f32 %v92_v32, %v87_v28  ;;  %v95_v34 = vadd.f32 %v92_v32, %v88_v29 }
 0x134   :  { %v96_v35 = vmul.f32 %v759_v30, %v94_v33  ;;  %v97_v36 = vmul.f32 %v762_v31, %v95_v34 }
 0x136   :  { %147 = vrot.lane.b32.xlu1 %v97_v36, %s679_s1  ;;  %145 = vrot.lane.b32.xlu0 %v96_v35, %s679_s1 }
 0x13a   :  { %136 = vrot.lane.b32.xlu1 %v96_v35, %s680_s23  ;;  %118 = vrot.lane.b32.xlu0 %v97_v36, %s681_s24 }
 0x13e   :  { %138 = vrot.lane.b32.xlu1 %v97_v36, %s680_s23  ;;  %109 = vrot.lane.b32.xlu0 %v97_v36, %s682_s25 }
 0x142   :  { %127 = vrot.lane.b32.xlu1 %v96_v35, %s683_s26  ;;  %100 = vrot.lane.b32.xlu0 %v97_v36, %s684_s27 }
 0x146   :  { %129 = vrot.lane.b32.xlu1 %v97_v36, %s683_s26 }
 0x14a   :  { %116 = vrot.lane.b32.xlu1 %v96_v35, %s681_s24 }
 0x14e   :  { %107 = vrot.lane.b32.xlu1 %v96_v35, %s682_s25 }
 0x152   :  { %98 = vrot.lane.b32.xlu1 %v96_v35, %s684_s27 }
 0x156   :  { %170 = vperm.xlu1 %637, %v741_v17  }
 0x15a   :  { %639 = vset.pattern.permute.xlu1 %v687_v14 }
 0x1a8   :  { %v148_v38 = vpop.permute.xlu1 %147  ;;  %v146_v39 = vpop.permute.xlu0 %145 }
 0x1a9   :  { %v151_v40 = vsel %vm149_vm3, %v148_v38, %v146_v39  ;;  %v150_v41 = vsel %vm149_vm3, %v146_v39, %v148_v38 }
 0x1aa   :  { %195 = vmatprep.subr.mxu0 %v151_v40 }
 0x1ab   :  { %196 = vmatpush1.msra.mxu0 %v150_v41  ;;  %v688_v41 = vmov 7  }
 0x1ac   :  { %v137_v42 = vpop.permute.xlu1 %136  ;;  %v119_v47 = vpop.permute.xlu0 %118 }
 0x1b0   :  { %v139_v43 = vpop.permute.xlu1 %138  ;;  %v110_v54 = vpop.permute.xlu0 %109 }
 0x1b1   :  { %v142_v44 = vsel %vm140_vm4, %v139_v43, %v137_v42  ;;  %v141_v45 = vsel %vm140_vm4, %v137_v42, %v139_v43 }
 0x1b2   :  { %197 = vmatprep.subr.mxu0 %v142_v44 }
 0x1b3   :  { %198 = vmatpush1.msra.mxu0 %v141_v45 }
 0x1b4   :  { %v128_v46 = vpop.permute.xlu1 %127  ;;  %v101_v58 = vpop.permute.xlu0 %100 }
 0x1b8   :  { %v130_v48 = vpop.permute.xlu1 %129 }
 0x1b9   :  { %v133_v49 = vsel %vm131_vm5, %v130_v48, %v128_v46  ;;  %v132_v50 = vsel %vm131_vm5, %v128_v46, %v130_v48 }
 0x1ba   :  { %199 = vmatprep.subr.mxu0 %v133_v49 }
 0x1bb   :  { %200 = vmatpush1.msra.mxu0 %v132_v50 }
 0x1bc   :  { %v117_v51 = vpop.permute.xlu1 %116  ;;  %201 = vmatprep.subr.mxu0 %v97_v36 }
 0x1bd   :  { %202 = vmatpush1.msra.mxu0 %v96_v35  ;;  %v121_v52 = vsel %vm120_vm6, %v117_v51, %v119_v47  ;;  %v122_v53 = vsel %vm120_vm6, %v119_v47, %v117_v51 }
 0x1be   :  { %203 = vmatprep.subr.mxu0 %v121_v52 }
 0x1bf   :  { %204 = vmatpush1.msra.mxu0 %v122_v53 }
 0x1c0   :  { %v108_v55 = vpop.permute.xlu1 %107 }
 0x1c1   :  { %v112_v56 = vsel %vm111_vm7, %v108_v55, %v110_v54  ;;  %v113_v57 = vsel %vm111_vm7, %v110_v54, %v108_v55 }
 0x1c2   :  { %205 = vmatprep.subr.mxu0 %v112_v56 }
 0x1c3   :  { %206 = vmatpush1.msra.mxu0 %v113_v57 }
 0x1c4   :  { %v99_v59 = vpop.permute.xlu1 %98 }
 0x1c5   :  { %v103_v60 = vsel %vm102_vm8, %v99_v59, %v101_v58  ;;  %v104_v61 = vsel %vm102_vm8, %v101_v58, %v99_v59  ;;  %v318_v58 = vld [vmem:[%s872_s3] sm:$0xff]  ;;  %v689_v59 = vmov 9  }
 0x1c6   :  { %207 = vmatprep.subr.mxu0 %v103_v60 }
 0x1c7   :  { %208 = vmatpush1.msra.mxu0 %v104_v61 }
 0x1c8   :  { %609 = vmatmul.mubr.msk.f32.vlgmr.msra.gmra.mxu0 %vm173_vm9, %v154_v62 }
 0x1d1   :  { %v171_v63 = vpop.permute.xlu1 %170 }
 0x288   :  { %v243_v0 = vpop.f32.mrf.mxu0 }
 0x289   :  { %v244_v1 = vadd.f32 %v243_v0, %v171_v63 }
 0x28a   :  { %v245_v3 = vpop.f32.mrf.mxu0 }
 0x28b   :  { %v248_v4 = vmax.f32 %v244_v1, 0.0  ;;  %v246_v5 = vadd.f32 %v245_v3, %v171_v63 }
 0x28d   :  { %v250_v6 = vmul.f32 %v759_v30, %v248_v4  ;;  %v249_v7 = vmax.f32 %v246_v5, 0.0 }
 0x28f   :  { %v251_v8 = vmul.f32 %v762_v31, %v249_v7  ;;  %v255_v10 = vmul.f32 %v250_v6, %v250_v6 }
 0x291   :  { %v252_v9 = vadd.f32 %v251_v8, %v250_v6  ;;  %v256_v11 = vmul.f32 %v251_v8, %v251_v8 }
 0x293   :  { %253 = vadd.xlane.f32.xlu0 %v252_v9  ;;  %v257_v12 = vadd.f32 %v256_v11, %v255_v10  ;;  %v690_v10 = vmov 2   ;;  %v691_v11 = vmov 3  }
 0x295   :  { %258 = vadd.xlane.f32.xlu1 %v257_v12  ;;  %v692_v12 = vmov 8  }
 0x2a6   :  { %277 = vperm.xlu1 %639, %v741_v17  }
 0x2aa   :  { %640 = vset.pattern.permute.xlu1 %v688_v41 }
 0x31c   :  { %v254_v15 = vpop.xlane.xlu0 %253 }
 0x31d   :  { %v260_v16 = vmul.f32 0.03125, %v254_v15 }
 0x31e   :  { %v259_v18 = vpop.xlane.xlu1 %258 }
 0x31f   :  { %v261_v20 = vmul.f32 0.03125, %v259_v18  ;;  %v262_v21 = vmul.f32 %v260_v16, %v260_v16  ;;  %v266_v29 = vsub.f32 %v250_v6, %v260_v16  ;;  %v267_v32 = vsub.f32 %v251_v8, %v260_v16 }
 0x321   :  { %v263_v23 = vsub.f32 %v261_v20, %v262_v21 }
 0x322   :  { %v278_v34 = vpop.permute.xlu1 %277 }
 0x323   :  { %v264_v24 = vadd.f32 1e-05, %v263_v23 }
 0x325   :  { %650 = vrsqrt.f32 %v264_v24 }
 0x332   :  { %v651_v25 = vpop.eup %650 }
 0x333   :  { %v268_v28 = vmul.f32 %v651_v25, %v741_v17 }
 0x335   :  { %271 = vperm.xlu0 %638, %v268_v28  }
 0x339   :  { %641 = vset.pattern.permute.xlu0 %v692_v12 }
 0x3b0   :  { %v272_v33 = vpop.permute.xlu0 %271 }
 0x3b1   :  { %v274_v35 = vmul.f32 %v272_v33, %v266_v29  ;;  %v275_v36 = vmul.f32 %v272_v33, %v267_v32 }
 0x3b3   :  { %v280_v37 = vadd.f32 %v278_v34, %v274_v35  ;;  %v281_v38 = vadd.f32 %v278_v34, %v275_v36 }
 0x3b5   :  { %v282_v39 = vmul.f32 %v759_v30, %v280_v37  ;;  %v283_v40 = vmul.f32 %v762_v31, %v281_v38 }
 0x3b7   :  { %294 = vrot.lane.b32.xlu0 %v283_v40, %s681_s24  ;;  %310 = vrot.lane.b32.xlu1 %v282_v39, %s680_s23 }
 0x3bb   :  { %286 = vrot.lane.b32.xlu0 %v283_v40, %s682_s25  ;;  %312 = vrot.lane.b32.xlu1 %v283_v40, %s680_s23 }
 0x3bf   :  { %302 = vrot.lane.b32.xlu1 %v282_v39, %s683_s26 }
 0x3c3   :  { %304 = vrot.lane.b32.xlu1 %v283_v40, %s683_s26 }
 0x3c7   :  { %292 = vrot.lane.b32.xlu1 %v282_v39, %s681_s24 }
 0x3cb   :  { %284 = vrot.lane.b32.xlu1 %v282_v39, %s682_s25 }
 0x3cf   :  { %330 = vperm.xlu1 %640, %v741_v17  }
 0x3d3   :  { %642 = vset.pattern.permute.xlu1 %v689_v59 }
 0x429   :  { %v311_v42 = vpop.permute.xlu1 %310  ;;  %v295_v50 = vpop.permute.xlu0 %294 }
 0x42d   :  { %v313_v43 = vpop.permute.xlu1 %312  ;;  %v287_v54 = vpop.permute.xlu0 %286 }
 0x42e   :  { %v315_v44 = vsel %vm140_vm4, %v313_v43, %v311_v42  ;;  %v314_v45 = vsel %vm140_vm4, %v311_v42, %v313_v43  ;;  %v693_v42 = vmov 10   ;;  %v694_v43 = vmov 11  }
 0x42f   :  { %359 = vmatprep.subr.mxu1 %v315_v44 }
 0x430   :  { %360 = vmatpush1.msra.mxu1 %v314_v45 }
 0x431   :  { %v303_v46 = vpop.permute.xlu1 %302 }
 0x435   :  { %v305_v47 = vpop.permute.xlu1 %304 }
 0x436   :  { %v307_v48 = vsel %vm131_vm5, %v305_v47, %v303_v46  ;;  %v306_v49 = vsel %vm131_vm5, %v303_v46, %v305_v47 }
 0x437   :  { %361 = vmatprep.subr.mxu1 %v307_v48 }
 0x438   :  { %362 = vmatpush1.msra.mxu1 %v306_v49  ;;  %v476_v49 = vld [vmem:[%s873_s4] sm:$0xff] }
 0x439   :  { %363 = vmatprep.subr.mxu1 %v283_v40  ;;  %v293_v51 = vpop.permute.xlu1 %292 }
 0x43a   :  { %364 = vmatpush1.msra.mxu1 %v282_v39  ;;  %v296_v52 = vsel %vm120_vm6, %v293_v51, %v295_v50  ;;  %v297_v53 = vsel %vm120_vm6, %v295_v50, %v293_v51  ;;  %v477_v50 = vld [vmem:[%s873_s4 + $0x8] sm:$0xff]  ;;  %s654_s4 = scalar_lea.vmem %s596_s10, 256 }
 0x43b   :  { %365 = vmatprep.subr.mxu1 %v296_v52  ;;  %p655_p0 = scmp.ne.s32.totalorder %s596_s10, %s654_s4  ;;  %p660_p2 = scmp.lt.s32.totalorder %s654_s4, %s654_s4 }
 0x43c   :  { %366 = vmatpush1.msra.mxu1 %v297_v53 }
 0x43d   :  { %v285_v55 = vpop.permute.xlu1 %284  ;;  %p661_p3 = por %p660_p2, %p659_p1 }
 0x43e   :  { %v288_v56 = vsel %vm111_vm7, %v285_v55, %v287_v54  ;;  %v289_v57 = vsel %vm111_vm7, %v287_v54, %v285_v55 }
 0x43f   :  { %367 = vmatprep.subr.mxu1 %v288_v56  ;;  %p662_p4 = pnand %p661_p3, %p655_p0 }
 0x440   :  { %368 = vmatpush1.msra.mxu1 %v289_v57 }
 0x441   :  { %610 = vmatmul.mubr.msk.f32.vlgmr.msra.gmra.mxu1 %vm333_vm10, %v318_v58 }
 0x442   :  { %557 = vmatprep.mubr.f32.mxu1 %v676_v2 }
 0x44a   :  { %v331_v60 = vpop.permute.xlu1 %330 }
 0x501   :  { %v403_v61 = vpop.f32.mrf.mxu1 }
 0x502   :  { %v404_v62 = vadd.f32 %v403_v61, %v331_v60 }
 0x503   :  { %v405_v63 = vpop.f32.mrf.mxu1 }
 0x504   :  { %v408_v0 = vmax.f32 %v404_v62, 0.0  ;;  %v406_v1 = vadd.f32 %v405_v63, %v331_v60 }
 0x506   :  { %v410_v3 = vmul.f32 %v759_v30, %v408_v0  ;;  %v409_v4 = vmax.f32 %v406_v1, 0.0 }
 0x508   :  { %v411_v5 = vmul.f32 %v762_v31, %v409_v4  ;;  %v415_v7 = vmul.f32 %v410_v3, %v410_v3 }
 0x50a   :  { %v412_v6 = vadd.f32 %v411_v5, %v410_v3  ;;  %v416_v8 = vmul.f32 %v411_v5, %v411_v5 }
 0x50c   :  { %413 = vadd.xlane.f32.xlu0 %v412_v6  ;;  %v417_v9 = vadd.f32 %v416_v8, %v415_v7 }
 0x50e   :  { %418 = vadd.xlane.f32.xlu1 %v417_v9 }
 0x51f   :  { %437 = vperm.xlu1 %642, %v741_v17  }
 0x523   :  { %643 = vset.pattern.permute.xlu1 %v690_v10 }
 0x524   :  { %463 = vperm.xlu1 %643, %v744_v19  }
 0x528   :  { %644 = vset.pattern.permute.xlu1 %v691_v11 }
 0x529   :  { %469 = vperm.xlu1 %644, %v741_v17  }
 0x52d   :  { %646 = vset.pattern.permute.xlu1 %v694_v43 }
 0x595   :  { %v414_v13 = vpop.xlane.xlu0 %413 }
 0x596   :  { %v420_v14 = vmul.f32 0.03125, %v414_v13 }
 0x597   :  { %v419_v15 = vpop.xlane.xlu1 %418 }
 0x598   :  { %v421_v16 = vmul.f32 0.03125, %v419_v15  ;;  %v422_v18 = vmul.f32 %v420_v14, %v420_v14  ;;  %v426_v35 = vsub.f32 %v410_v3, %v420_v14  ;;  %v427_v36 = vsub.f32 %v411_v5, %v420_v14 }
 0x59a   :  { %v423_v20 = vsub.f32 %v421_v16, %v422_v18 }
 0x59b   :  { %v438_v21 = vpop.permute.xlu1 %437 }
 0x59c   :  { %v424_v23 = vadd.f32 1e-05, %v423_v20 }
 0x59e   :  { %652 = vrsqrt.f32 %v424_v23 }
 0x59f   :  { %v464_v24 = vpop.permute.xlu1 %463 }
 0x5a0   :  { %v466_v25 = vmul.f32 %v464_v24, %v751_v26  ;;  %v467_v19 = vmul.f32 %v464_v24, %v753_v27 }
 0x5a4   :  { %v470_v28 = vpop.permute.xlu1 %469 }
 0x5a5   :  { %v472_v29 = vadd.f32 %v470_v28, %v466_v25  ;;  %v473_v32 = vadd.f32 %v470_v28, %v467_v19 }
 0x5a7   :  { %517 = vmatprep.subr.mxu1 %v473_v32 }
 0x5a8   :  { %518 = vmatpush1.msra.mxu1 %v472_v29 }
 0x5ab   :  { %v653_v33 = vpop.eup %652 }
 0x5ac   :  { %v428_v34 = vmul.f32 %v653_v33, %v741_v17 }
 0x5ae   :  { %431 = vperm.xlu0 %641, %v428_v34  }
 0x5b2   :  { %645 = vset.pattern.permute.xlu0 %v693_v42 }
 0x5b3   :  { %571 = vperm.xlu0 %645, %v741_v17  }
 0x5b7   :  { %647 = vset.pattern.permute.xlu0 %v694_v43 }
 0x629   :  { %v432_v37 = vpop.permute.xlu0 %431 }
 0x62a   :  { %v434_v38 = vmul.f32 %v432_v37, %v426_v35  ;;  %v435_v39 = vmul.f32 %v432_v37, %v427_v36 }
 0x62c   :  { %v440_v40 = vadd.f32 %v438_v21, %v434_v38  ;;  %v441_v41 = vadd.f32 %v438_v21, %v435_v39 }
 0x62e   :  { %v442_v26 = vmul.f32 %v759_v30, %v440_v40  ;;  %v443_v27 = vmul.f32 %v762_v31, %v441_v41  ;;  %v572_v51 = vpop.permute.xlu0 %571 }
 0x630   :  { %454 = vrot.lane.b32.xlu1 %v442_v26, %s683_s26 }
 0x634   :  { %456 = vrot.lane.b32.xlu1 %v443_v27, %s683_s26 }
 0x638   :  { %444 = vrot.lane.b32.xlu1 %v442_v26, %s681_s24 }
 0x63c   :  { %446 = vrot.lane.b32.xlu1 %v443_v27, %s681_s24 }
 0x640   :  { %579 = vperm.xlu1 %646, %v741_v17  }
 0x6a2   :  { %v455_v30 = vpop.permute.xlu1 %454 }
 0x6a6   :  { %v457_v44 = vpop.permute.xlu1 %456 }
 0x6a7   :  { %v458_v31 = vsel %vm131_vm5, %v455_v30, %v457_v44  ;;  %v459_v45 = vsel %vm131_vm5, %v457_v44, %v455_v30 }
 0x6a8   :  { %519 = vmatprep.subr.mxu1 %v459_v45 }
 0x6a9   :  { %520 = vmatpush1.msra.mxu1 %v458_v31 }
 0x6aa   :  { %521 = vmatprep.subr.mxu1 %v443_v27  ;;  %v445_v46 = vpop.permute.xlu1 %444 }
 0x6ab   :  { %522 = vmatpush1.msra.mxu1 %v442_v26 }
 0x6ae   :  { %v447_v47 = vpop.permute.xlu1 %446 }
 0x6af   :  { %v449_v48 = vsel %vm120_vm6, %v447_v47, %v445_v46  ;;  %v448_v17 = vsel %vm120_vm6, %v445_v46, %v447_v47 }
 0x6b0   :  { %523 = vmatprep.subr.mxu1 %v448_v17 }
 0x6b1   :  { %524 = vmatpush1.msra.mxu1 %v449_v48 }
 0x6b2   :  { %611 = vmatmul.mubr.msk.f32.vlgmr.msra.gmra.mxu1 %vm486_vm11, %v476_v49 }
 0x6b3   :  { %563 = vmatprep.mubr.f32.mxu1 %v676_v2 }
 0x6b6   :  { %612 = vmatmul.mubr.msk.f32.gmra.mxu1 %vm486_vm11, %v477_v50 }
 0x6bb   :  { %v580_v54 = vpop.permute.xlu1 %579 }
 0x772   :  { %v559_v52 = vpop.f32.mrf.mxu1 }
 0x773   :  { %v574_v53 = vadd.f32 %v572_v51, %v559_v52 }
 0x774   :  { %v561_v22 = vpop.f32.mrf.mxu1 }
 0x775   :  { %v575_v55 = vadd.f32 %v572_v51, %v561_v22  ;;  %v576_v57 = vmax.f32 %v574_v53, 0.0 }
 0x776   :  { %v565_v56 = vpop.f32.mrf.mxu1 }
 0x777   :  { %v582_v58 = vadd.f32 %v580_v54, %v565_v56  ;;  %v577_v60 = vmax.f32 %v575_v55, 0.0 }
 0x778   :  { %v567_v59 = vpop.f32.mrf.mxu1 }
 0x779   :  { %v584_v2 = vadd.f32 %v582_v58, %v576_v57  ;;  %v583_v61 = vadd.f32 %v580_v54, %v567_v59 }
 0x77b   :  { %587 = vst.msk [vmem:[#allocation4] sm:$0xff] %vm586_vm12, %v584_v2  ;;  %v585_v62 = vadd.f32 %v583_v61, %v577_v60 }
 0x77d   :  { %589 = vst.msk [vmem:[#allocation4 + $0x8] sm:$0xff] %vm586_vm12, %v585_v62 }
 0x77e   :  { %665 = shalt.err (!%p662_p4)
}
 0x77f   :  { %s696_s11 = smov 128   ;;  %s697_s12 = smov 8  }
 0x780   :  { %601 = dma.vmem_to_hbm [thread:$0]  %s596_s10, 256, %s874_s5, [#allocation5], %s696_s11, %s696_s11, %s697_s12  }
 0x781   :  { %674 = dma.done.wait [#allocation5], 256  }
 0x782   :  { %675 = vsyncadd [#allocation5], 4294967040 }
 0x783   :  { %605 = vsyncpa [#allocation5], 1 }

</bundles_post_ra>
